<compile_context>
chip_gen: v7x
topology: tpu7x:2x2x1
jax: 0.10.0
libtpu: 0.0.40
codegen_flags: <defaults>
</compile_context>

<pallas_src>
import functools

import jax
import jax.numpy as jnp
from jax import lax
from jax.experimental import pallas as pl
from jax.experimental.pallas import tpu as pltpu

BLOCK_SIZE = 64     # max sequence length (causal mask buffer size in torch)
N_EMBD = 128        # C
HEAD_SIZE = 32      # head_size


def _head_kernel(x_ref, wqkv_ref, o_ref, *, n_embd, head_size, compute_dtype):
    """One grid step == `Bt` batch rows.

    x_ref    : (Bt, T, C)  VMEM
    wqkv_ref : (C, 3H)     VMEM  (pre-transposed, fused [Wq^T | Wk^T | Wv^T])
    o_ref    : (Bt, T, H)  VMEM
    """
    Bt, T, C = x_ref.shape
    H = head_size

    # Fused QKV projection on a (Bt*T, C) row slab: fills MXU rows and replaces
    # three narrow N=32 matmuls with a single N=3H pass.
    xs = x_ref[...].reshape(Bt * T, C).astype(compute_dtype)
    w = wqkv_ref[...].astype(compute_dtype)                       # (C, 3H)
    qkv = jnp.dot(xs, w, preferred_element_type=jnp.float32)      # (Bt*T, 3H)
    qkv = qkv.reshape(Bt, T, 3 * H)

    # Scale q (T*H elems) instead of the (T,T) score matrix. C**-0.5 as in v2.py.
    scale = jnp.float32(n_embd) ** jnp.float32(-0.5)
    q = (qkv[:, :, 0:H] * scale).astype(compute_dtype)
    k = qkv[:, :, H:2 * H].astype(compute_dtype)
    v = qkv[:, :, 2 * H:3 * H].astype(compute_dtype)

    # Scores via batched contraction over the feature dim -> no k transpose
    # materialized; MXU is fed directly from the dot_general spec.
    wei = jnp.einsum("bqd,bkd->bqk", q, k,
                     preferred_element_type=jnp.float32)          # (Bt, T, T)

    # Causal (tril) mask. Diagonal is always unmasked, so -inf is NaN-safe.
    row = lax.broadcasted_iota(jnp.int32, (T, T), 0)
    col = lax.broadcasted_iota(jnp.int32, (T, T), 1)
    mask = jnp.broadcast_to((col <= row)[None, :, :], wei.shape)
    wei = jnp.where(mask, wei, -jnp.inf)

    # Numerically stable softmax along the key axis.
    m = jnp.max(wei, axis=-1, keepdims=True)
    e = jnp.exp(wei - m)
    denom = jnp.sum(e, axis=-1, keepdims=True)
    # approx=True (EUP vrcp) would be free but loosens tolerance; keep exact.
    p = e * pl.reciprocal(denom, approx=False)

    # Dropout == identity (eval mode).
    # TODO(synk): optional train-mode dropout via pltpu.prng_random_bits.

    out = jnp.einsum("bqk,bkd->bqd", p.astype(compute_dtype), v,
                     preferred_element_type=jnp.float32)          # (Bt, T, H)
    # NOTE: H=32 (<128 lanes) -> masked partial stores on writeback; padding H
    # to 128 in scratch + wrapper slice would be lane-dense but 4x HBM traffic.
    o_ref[...] = out.astype(o_ref.dtype)


def head_forward(x, w_key, w_query, w_value, *,
                 compute_dtype=jnp.float32, block_batch=None):
    """x: (B, T, C) float32; w_*: (H, C) PyTorch-layout. Returns (B, T, H).

    compute_dtype=jnp.bfloat16 feeds the MXU bf16 operands (native fast path on
    v6e/v7x) with f32 accumulation; default f32 matches the reference tightly.
    """
    B, T, C = x.shape
    H = w_key.shape[0]
    assert C == N_EMBD and T <= BLOCK_SIZE

    # Wrapper-side layout plumbing (free at trace time): fused, pre-transposed
    # weight with columns [Wq^T | Wk^T | Wv^T] -> (C, 3H).
    w_qkv = jnp.concatenate([w_query.T, w_key.T, w_value.T],
                            axis=1).astype(x.dtype)

    # Rows per grid step: aim for Bt*T ~ 256 (fills v6e/v7x MXU rows, >=128 for
    # v5e) while keeping Bt a divisor of B so the grid tiles exactly.
    if block_batch is None:
        block_batch = max(1, min(B, max(1, 256 // T)))
        while B % block_batch != 0:
            block_batch -= 1
    assert B % block_batch == 0

    kernel = functools.partial(_head_kernel, n_embd=C, head_size=H,
                               compute_dtype=compute_dtype)

    return pl.pallas_call(
        kernel,
        out_shape=jax.ShapeDtypeStruct((B, T, H), x.dtype),
        grid_spec=pltpu.PrefetchScalarGridSpec(
            num_scalar_prefetch=0,
            grid=(B // block_batch,),
            in_specs=[
                pl.BlockSpec((block_batch, T, C), lambda b: (b, 0, 0)),  # x slab
                pl.BlockSpec((C, 3 * H), lambda b: (0, 0)),              # fused W
            ],
            out_specs=pl.BlockSpec((block_batch, T, H), lambda b: (b, 0, 0)),
        ),
        compiler_params=pltpu.CompilerParams(
            dimension_semantics=("parallel",),   # batch tiles shard across TCs
            vmem_limit_bytes=32 * 1024 * 1024,   # explicit budget, safe on v7x
        ),
    )(x, w_qkv)


def _reference(x, w_key, w_query, w_value):
    """Pure-JAX reference matching the PyTorch forward (eval mode)."""
    B, T, C = x.shape
    k = x @ w_key.T
    q = x @ w_query.T
    v = x @ w_value.T
    wei = (q @ jnp.swapaxes(k, -2, -1)) * (C ** -0.5)
    mask = jnp.tril(jnp.ones((T, T), dtype=bool))
    wei = jnp.where(mask, wei, -jnp.inf)
    wei = jax.nn.softmax(wei, axis=-1)
    return wei @ v


if __name__ == "__main__":
    key = jax.random.PRNGKey(0)
    kx, kk, kq, kv = jax.random.split(key, 4)

    B, T, C, Hs = 2, BLOCK_SIZE, N_EMBD, HEAD_SIZE

    x = jax.random.normal(kx, (B, T, C), dtype=jnp.float32)
    # Deterministic "Linear(n_embd, head_size, bias=False)" weights, torch-style
    # uniform(-1/sqrt(C), 1/sqrt(C)) bound.
    bound = 1.0 / (C ** 0.5)
    w_key = jax.random.uniform(kk, (Hs, C), jnp.float32, -bound, bound)
    w_query = jax.random.uniform(kq, (Hs, C), jnp.float32, -bound, bound)
    w_value = jax.random.uniform(kv, (Hs, C), jnp.float32, -bound, bound)

    out = head_forward(x, w_key, w_query, w_value)
    out = jax.block_until_ready(out)

    ref = _reference(x, w_key, w_query, w_value)
    assert out.shape == (B, T, Hs), out.shape
    assert jnp.allclose(out, ref, atol=2e-5, rtol=2e-5), (
        float(jnp.max(jnp.abs(out - ref)))
    )

    print("KERNEL_OK")
</pallas_src>

<mosaic_0001>
module attributes {stable_mosaic.version = 11 : i64} {
  func.func @_head_kernel(%arg0: i32, %arg1: memref<2x64x128xf32, #tpu.memory_space<vmem>>, %arg2: memref<128x96xf32, #tpu.memory_space<vmem>>, %arg3: memref<2x64x32xf32, #tpu.memory_space<vmem>>) attributes {dimension_semantics = [#tpu.dimension_semantics<parallel>], iteration_bounds = array<i64: 1>, scalar_prefetch = 0 : i64, scratch_operands = 0 : i64, tpu.core_type = #tpu.core_type<tc>, window_params = [{transform_indices = @transform_0, window_bounds = array<i64: 2, 64, 128>}, {pipeline_mode = #tpu.pipeline_mode<synchronous>, transform_indices = @transform_1, window_bounds = array<i64: 128, 96>}, {transform_indices = @transform_2, window_bounds = array<i64: 2, 64, 32>}]} {
    %c0 = arith.constant 0 : index
    %c0_0 = arith.constant 0 : index
    %c0_1 = arith.constant 0 : index
    %0 = vector.load %arg1[%c0, %c0_0, %c0_1] : memref<2x64x128xf32, #tpu.memory_space<vmem>>, vector<2x64x128xf32>
    %1 = vector.shape_cast %0 : vector<2x64x128xf32> to vector<128x128xf32>
    %c0_2 = arith.constant 0 : index
    %c0_3 = arith.constant 0 : index
    %2 = vector.load %arg2[%c0_2, %c0_3] : memref<128x96xf32, #tpu.memory_space<vmem>>, vector<128x96xf32>
    %cst = arith.constant dense<0.000000e+00> : vector<128x96xf32>
    %3 = tpu.matmul %1, %2, %cst {dimension_numbers = #tpu.dot_dimension_numbers<[1], [0], [0], [1], [0, 0, 1, 1], [], []>} : vector<128x128xf32>, vector<128x96xf32>, vector<128x96xf32> -> vector<128x96xf32>
    %4 = vector.shape_cast %3 : vector<128x96xf32> to vector<2x64x96xf32>
    %cst_4 = arith.constant 1.280000e+02 : f32
    %cst_5 = arith.constant -5.000000e-01 : f32
    %5 = math.powf %cst_4, %cst_5 : f32
    %6 = vector.extract_strided_slice %4 {offsets = [0, 0, 0], sizes = [2, 64, 32], strides = [1, 1, 1]} : vector<2x64x96xf32> to vector<2x64x32xf32>
    %7 = vector.broadcast %5 : f32 to vector<2x64x32xf32>
    %8 = arith.mulf %6, %7 : vector<2x64x32xf32>
    %9 = vector.extract_strided_slice %4 {offsets = [0, 0, 32], sizes = [2, 64, 32], strides = [1, 1, 1]} : vector<2x64x96xf32> to vector<2x64x32xf32>
    %10 = vector.extract_strided_slice %4 {offsets = [0, 0, 64], sizes = [2, 64, 32], strides = [1, 1, 1]} : vector<2x64x96xf32> to vector<2x64x32xf32>
    "tpu.trace_start"() <{level = 10 : i32, message = "bqd,bkd->bqk"}> : () -> ()
    %cst_6 = arith.constant dense<0.000000e+00> : vector<2x64x64xf32>
    %11 = tpu.matmul %8, %9, %cst_6 {dimension_numbers = #tpu.dot_dimension_numbers<[2], [2], [1], [1], [0, 0, 0, 1, 1, 1], [0], [0]>} : vector<2x64x32xf32>, vector<2x64x32xf32>, vector<2x64x64xf32> -> vector<2x64x64xf32>
    "tpu.trace_stop"() : () -> ()
    %12 = tpu.iota {dimensions = array<i32: 0>} : vector<64x64xi32>
    %13 = tpu.iota {dimensions = array<i32: 1>} : vector<64x64xi32>
    %14 = arith.cmpi sle, %13, %12 : vector<64x64xi32>
    %15 = vector.shape_cast %14 : vector<64x64xi1> to vector<1x64x64xi1>
    %16 = vector.shape_cast %15 : vector<1x64x64xi1> to vector<1x64x64xi1>
    %17 = vector.broadcast %16 : vector<1x64x64xi1> to vector<2x64x64xi1>
    %cst_7 = arith.constant 0xFF800000 : f32
    %18 = vector.broadcast %cst_7 : f32 to vector<2x64x64xf32>
    %19 = arith.select %17, %11, %18 : vector<2x64x64xi1>, vector<2x64x64xf32>
    %cst_8 = arith.constant dense<0xFF800000> : vector<2x64xf32>
    %20 = vector.multi_reduction <maximumf>, %19, %cst_8 [2] : vector<2x64x64xf32> to vector<2x64xf32>
    %21 = vector.shape_cast %20 : vector<2x64xf32> to vector<2x64x1xf32>
    %22 = vector.broadcast %21 : vector<2x64x1xf32> to vector<2x64x64xf32>
    %23 = arith.subf %19, %22 : vector<2x64x64xf32>
    %24 = math.exp %23 : vector<2x64x64xf32>
    %cst_9 = arith.constant dense<0.000000e+00> : vector<2x64xf32>
    %25 = vector.multi_reduction <add>, %24, %cst_9 [2] : vector<2x64x64xf32> to vector<2x64xf32>
    %26 = vector.shape_cast %25 : vector<2x64xf32> to vector<2x64x1xf32>
    %27 = tpu.reciprocal %26 : vector<2x64x1xf32> -> vector<2x64x1xf32>
    %28 = vector.broadcast %27 : vector<2x64x1xf32> to vector<2x64x64xf32>
    %29 = arith.mulf %24, %28 : vector<2x64x64xf32>
    "tpu.trace_start"() <{level = 10 : i32, message = "bqk,bkd->bqd"}> : () -> ()
    %cst_10 = arith.constant dense<0.000000e+00> : vector<2x64x32xf32>
    %30 = tpu.matmul %29, %10, %cst_10 {dimension_numbers = #tpu.dot_dimension_numbers<[2], [1], [1], [2], [0, 0, 0, 1, 1, 2], [0], [0]>} : vector<2x64x64xf32>, vector<2x64x32xf32>, vector<2x64x32xf32> -> vector<2x64x32xf32>
    "tpu.trace_stop"() : () -> ()
    %c0_11 = arith.constant 0 : index
    %c0_12 = arith.constant 0 : index
    %c0_13 = arith.constant 0 : index
    %31 = vector.load %arg3[%c0_11, %c0_12, %c0_13] : memref<2x64x32xf32, #tpu.memory_space<vmem>>, vector<2x64x32xf32>
    tpu.vector_store %arg3[%c0_11, %c0_12, %c0_13], %30 {strides = array<i32>} : memref<2x64x32xf32, #tpu.memory_space<vmem>>, vector<2x64x32xf32>,
    return
  }
  func.func @transform_0(%arg0: i32) -> (i32, i32, i32) {
    %c0_i32 = arith.constant 0 : i32
    %c0_i32_0 = arith.constant 0 : i32
    %c0_i32_1 = arith.constant 0 : i32
    return %arg0, %c0_i32, %c0_i32_0 : i32, i32, i32
  }
  func.func @transform_1(%arg0: i32) -> (i32, i32) {
    %c0_i32 = arith.constant 0 : i32
    %c0_i32_0 = arith.constant 0 : i32
    %c0_i32_1 = arith.constant 0 : i32
    return %c0_i32, %c0_i32_0 : i32, i32
  }
  func.func @transform_2(%arg0: i32) -> (i32, i32, i32) {
    %c0_i32 = arith.constant 0 : i32
    %c0_i32_0 = arith.constant 0 : i32
    %c0_i32_1 = arith.constant 0 : i32
    return %arg0, %c0_i32, %c0_i32_0 : i32, i32, i32
  }
}

</mosaic_0001>

<bundles_post_ra>
// kernel: tpu_custom_call.1
= control target key start
LH: loop header
LB: loop body
LE: loop exit
PB: predicated region body
PF: predicated region fallthrough
CT: control target
= control target key end

     0   :  { %vm228_vm0 = vcmask 261120   ;;  %s1667_s16 = smov 96   ;;  %vm594_vm4 = vcmask 523264   ;;  %s2204_s1 = inlined_call_operand.vmem [shape: f32[128,96], index: 1, kind: input, shape index: {}]   ;;  %s2205_s0 = inlined_call_operand.vmem [shape: f32[2,64,128], index: 0, kind: input, shape index: {}]   ;;  %s2206_s2 = inlined_call_operand.vmem [shape: f32[2,64,32], index: 2, kind: output, shape index: {}]  }
   0x1   :  { %v27_v0 = vld [vmem:[%s2204_s1] sm:$0xff]  ;;  %v28_v1 = vld [vmem:[%s2204_s1 + $0x8] sm:$0xff]  ;;  %v29_v2 = vld [vmem:[%s2204_s1 + $0x10] sm:$0xff] }
   0x2   :  { %v1409_v3 = vpack.c.bf16 %v28_v1, %v27_v0  ;;  %v30_v4 = vld [vmem:[%s2204_s1 + $0x18] sm:$0xff]  ;;  %v31_v6 = vld [vmem:[%s2204_s1 + $0x20] sm:$0xff]  ;;  %v32_v7 = vld [vmem:[%s2204_s1 + $0x28] sm:$0xff] }
   0x3   :  { %v1413_v5 = vpack.c.bf16 %v30_v4, %v29_v2  ;;  %v1417_v8 = vpack.c.bf16 %v32_v7, %v31_v6  ;;  %v11_v9 = vld [vmem:[%s2205_s0] sm:$0xff]  ;;  %v33_v10 = vld [vmem:[%s2204_s1 + $0x30] sm:$0xff]  ;;  %v34_v11 = vld [vmem:[%s2204_s1 + $0x38] sm:$0xff] }
   0x4   :  { %1410 = vmatprep.subr.bf16.mxu0 %v1409_v3  ;;  %1273 = vmatprep.mubr.f32.mxu0 %v11_v9  ;;  %v1421_v12 = vpack.c.bf16 %v34_v11, %v33_v10  ;;  %v35_v13 = vld [vmem:[%s2204_s1 + $0x40] sm:$0xff]  ;;  %v36_v14 = vld [vmem:[%s2204_s1 + $0x48] sm:$0xff]  ;;  %v37_v16 = vld [vmem:[%s2204_s1 + $0x50] sm:$0xff] }
   0x5   :  { %1412 = vmatpush3.bf16.msra.mxu0 %v1409_v3  ;;  %v1425_v15 = vpack.c.bf16 %v36_v14, %v35_v13  ;;  %v38_v17 = vld [vmem:[%s2204_s1 + $0x58] sm:$0xff]  ;;  %v39_v19 = vld [vmem:[%s2204_s1 + $0x60] sm:$0xff]  ;;  %v40_v20 = vld [vmem:[%s2204_s1 + $0x68] sm:$0xff] }
   0x6   :  { %1414 = vmatprep.subr.bf16.mxu0 %v1413_v5  ;;  %v1429_v18 = vpack.c.bf16 %v38_v17, %v37_v16  ;;  %v1433_v21 = vpack.c.bf16 %v40_v20, %v39_v19  ;;  %v41_v22 = vld [vmem:[%s2204_s1 + $0x70] sm:$0xff]  ;;  %v42_v23 = vld [vmem:[%s2204_s1 + $0x78] sm:$0xff]  ;;  %v12_v25 = vld [vmem:[%s2205_s0 + $0x8] sm:$0xff] }
   0x7   :  { %v1437_v24 = vpack.c.bf16 %v42_v23, %v41_v22  ;;  %v13_v26 = vld [vmem:[%s2205_s0 + $0x10] sm:$0xff]  ;;  %v14_v27 = vld [vmem:[%s2205_s0 + $0x18] sm:$0xff]  ;;  %v15_v28 = vld [vmem:[%s2205_s0 + $0x20] sm:$0xff] }
   0x8   :  { %v16_v29 = vld [vmem:[%s2205_s0 + $0x28] sm:$0xff]  ;;  %v17_v30 = vld [vmem:[%s2205_s0 + $0x30] sm:$0xff]  ;;  %v18_v31 = vld [vmem:[%s2205_s0 + $0x38] sm:$0xff] }
   0x9   :  { %1416 = vmatpush3.bf16.msra.mxu0 %v1413_v5  ;;  %v19_v32 = vld [vmem:[%s2205_s0 + $0x40] sm:$0xff]  ;;  %v20_v33 = vld [vmem:[%s2205_s0 + $0x48] sm:$0xff]  ;;  %v21_v34 = vld [vmem:[%s2205_s0 + $0x50] sm:$0xff] }
   0xa   :  { %1418 = vmatprep.subr.bf16.mxu0 %v1417_v8  ;;  %v22_v35 = vld [vmem:[%s2205_s0 + $0x58] sm:$0xff]  ;;  %v23_v36 = vld [vmem:[%s2205_s0 + $0x60] sm:$0xff]  ;;  %v24_v37 = vld [vmem:[%s2205_s0 + $0x68] sm:$0xff] }
   0xb   :  { %v25_v38 = vld [vmem:[%s2205_s0 + $0x70] sm:$0xff]  ;;  %v26_v39 = vld [vmem:[%s2205_s0 + $0x78] sm:$0xff]  ;;  %s1668_s0 = smov 64   ;;  %vm1850_vm1 = vmpackc.low %vm228_vm0, %vm228_vm0 }
   0xd   :  { %1420 = vmatpush3.bf16.msra.mxu0 %v1417_v8 }
   0xe   :  { %1422 = vmatprep.subr.bf16.mxu0 %v1421_v12 }
  0x11   :  { %1424 = vmatpush3.bf16.msra.mxu0 %v1421_v12 }
  0x12   :  { %1426 = vmatprep.subr.bf16.mxu0 %v1425_v15 }
  0x15   :  { %1428 = vmatpush3.bf16.msra.mxu0 %v1425_v15 }
  0x16   :  { %1430 = vmatprep.subr.bf16.mxu0 %v1429_v18 }
  0x19   :  { %1432 = vmatpush3.bf16.msra.mxu0 %v1429_v18 }
  0x1a   :  { %1434 = vmatprep.subr.bf16.mxu0 %v1433_v21 }
  0x1d   :  { %1436 = vmatpush3.bf16.msra.mxu0 %v1433_v21 }
  0x1e   :  { %1438 = vmatprep.subr.bf16.mxu0 %v1437_v24 }
  0x21   :  { %1440 = vmatpush3.bf16.msra.mxu0 %v1437_v24 }
  0x24   :  { %1274 = vmatmul.mubr.f32.vlgmr.msra.gmra.mrb[0].mxu0 %v12_v25 }
  0x25   :  { %1276 = vmatprep.mubr.f32.mxu0 %v13_v26 }
  0x28   :  { %1277 = vmatmul.mubr.f32.gmra.mrb[2].mxu0 %v14_v27 }
  0x29   :  { %1279 = vmatprep.mubr.f32.mxu0 %v15_v28 }
  0x2c   :  { %1280 = vmatmul.mubr.f32.gmra.mrb[4].mxu0 %v16_v29 }
  0x2d   :  { %1282 = vmatprep.mubr.f32.mxu0 %v17_v30 }
  0x30   :  { %1283 = vmatmul.mubr.f32.gmra.mrb[6].mxu0 %v18_v31 }
  0x31   :  { %1285 = vmatprep.mubr.f32.mxu0 %v19_v32 }
  0x34   :  { %1286 = vmatmul.mubr.f32.gmra.mrb[8].mxu0 %v20_v33 }
  0x35   :  { %1288 = vmatprep.mubr.f32.mxu0 %v21_v34 }
  0x38   :  { %1289 = vmatmul.mubr.f32.gmra.mrb[10].mxu0 %v22_v35 }
  0x39   :  { %1291 = vmatprep.mubr.f32.mxu0 %v23_v36 }
  0x3c   :  { %1292 = vmatmul.mubr.f32.gmra.mrb[12].mxu0 %v24_v37 }
  0x3d   :  { %1294 = vmatprep.mubr.f32.mxu0 %v25_v38 }
  0x40   :  { %1295 = vmatmul.mubr.f32.gmra.mrb[14].mxu0 %v26_v39 }
  0xf7   :  { %v1780_v40 = vpop.f32.mrb[0].mxu0 }
  0xf8   :  { %v109_v41 = vpop.f32.mrb[1].mxu0 }
  0xf9   :  { %v1563_v42 = vpack.i.bf16 %v1780_v40, %v109_v41  ;;  %v188_v43 = vmul.f32 0.088388346, %v109_v41  ;;  %v189_v41 = vmul.f32 0.088388346, %v1780_v40 }
  0xfb   :  { %1524 = vrot.lane.b32.xlu0 %v1563_v42, %s1667_s16  ;;  %1313 = vmatprep.mubr.msk.f32.mxu1 %vm228_vm0, %v188_v43  ;;  %v1785_v44 = vpop.f32.mrb[2].mxu0 }
  0xfc   :  { %v1787_v45 = vpop.f32.mrb[3].mxu0 }
  0xfd   :  { %v1568_v46 = vpack.i.bf16 %v1785_v44, %v1787_v45 }
  0xff   :  { %1529 = vrot.lane.b32.xlu0 %v1568_v46, %s1667_s16  ;;  %v1792_v47 = vpop.f32.mrb[4].mxu0 }
 0x100   :  { %v1794_v48 = vpop.f32.mrb[5].mxu0 }
 0x101   :  { %v1573_v49 = vpack.i.bf16 %v1792_v47, %v1794_v48  ;;  %v192_v40 = vmul.f32 0.088388346, %v1794_v48 }
 0x103   :  { %v1798_v50 = vpop.f32.mrb[6].mxu0  ;;  %1534 = vrot.lane.b32.xlu1 %v1573_v49, %s1667_s16 }
 0x104   :  { %v1801_v51 = vpop.f32.mrb[7].mxu0  ;;  %v195_v48 = vmul.f32 0.088388346, %v1798_v50 }
 0x105   :  { %v1578_v52 = vpack.i.bf16 %v1798_v50, %v1801_v51 }
 0x107   :  { %v1805_v53 = vpop.f32.mrb[8].mxu0  ;;  %1544 = vrot.lane.b32.xlu0 %v1578_v52, %s1667_s16 }
 0x108   :  { %v149_v54 = vpop.f32.mrb[9].mxu0 }
 0x109   :  { %v1809_v55 = vpack.i.bf16 %v1805_v53, %v149_v54  ;;  %v196_v56 = vmul.f32 0.088388346, %v149_v54 }
 0x10b   :  { %1539 = vrot.lane.b32.xlu1 %v1809_v55, %s1667_s16  ;;  %v1813_v57 = vpop.f32.mrb[10].mxu0  ;;  %1341 = vmatprep.mubr.msk.f32.mxu0 %vm228_vm0, %v196_v56 }
 0x10c   :  { %v1816_v58 = vpop.f32.mrb[11].mxu0 }
 0x10d   :  { %v1820_v59 = vpack.i.bf16 %v1813_v57, %v1816_v58 }
 0x10f   :  { %v1822_v60 = vpop.f32.mrb[12].mxu0  ;;  %1549 = vrot.lane.b32.xlu1 %v1820_v59, %s1667_s16 }
 0x110   :  { %v1826_v61 = vpop.f32.mrb[13].mxu0  ;;  %v201_v50 = vmul.f32 0.088388346, %v1822_v60 }
 0x111   :  { %v1830_v62 = vpack.i.bf16 %v1822_v60, %v1826_v61  ;;  %v200_v5 = vmul.f32 0.088388346, %v1826_v61 }
 0x113   :  { %1554 = vrot.lane.b32.xlu0 %v1830_v62, %s1667_s16  ;;  %v1834_v63 = vpop.f32.mrb[14].mxu0 }
 0x114   :  { %v1836_v0 = vpop.f32.mrb[15].mxu0 }
 0x115   :  { %v1840_v1 = vpack.i.bf16 %v1834_v63, %v1836_v0 }
 0x117   :  { %1569 = vrot.lane.b32.xlu0 %v1568_v46, %s1668_s0  ;;  %1559 = vrot.lane.b32.xlu1 %v1840_v1, %s1667_s16  ;;  %v190_v46 = vmul.f32 0.088388346, %v1787_v45 }
 0x11b   :  { %1564 = vrot.lane.b32.xlu1 %v1563_v42, %s1668_s0 }
 0x11f   :  { %1574 = vrot.lane.b32.xlu1 %v1573_v49, %s1668_s0 }
 0x123   :  { %1579 = vrot.lane.b32.xlu1 %v1578_v52, %s1668_s0 }
 0x16d   :  { %v1525_v2 = vpop.permute.xlu0 %1524 }
 0x16e   :  { %v1527_v3 = vunpack.i.h.bf16 %v1525_v2  ;;  %v1526_v4 = vunpack.i.l.bf16 %v1525_v2  ;;  %v191_v2 = vmul.f32 0.088388346, %v1785_v44  ;;  %v194_v44 = vmul.f32 0.088388346, %v1801_v51 }
 0x16f   :  { %v198_v51 = vmul.f32 0.088388346, %v1816_v58  ;;  %v543_v58 = vlaneseq }
 0x170   :  { %v1441_v6 = vpack.c.bf16 %v1527_v3, %v1526_v4 }
 0x171   :  { %v1530_v7 = vpop.permute.xlu0 %1529  ;;  %v1914_v61 = vand.u32 127, %v543_v58 }
 0x172   :  { %1443 = vmatprep.subr.msk.bf16.mxu1 %vm1850_vm1, %v1441_v6  ;;  %v1532_v8 = vunpack.i.h.bf16 %v1530_v7  ;;  %v1531_v9 = vunpack.i.l.bf16 %v1530_v7  ;;  %v193_v7 = vmul.f32 0.088388346, %v1792_v47  ;;  %v197_v47 = vmul.f32 0.088388346, %v1805_v53 }
 0x173   :  { %1446 = vmatpush3.bf16.xpose.msk.msra.mxu1 %vm1850_vm1, %v1441_v6  ;;  %v203_v53 = vmul.f32 0.088388346, %v1834_v63 }
 0x174   :  { %v1447_v10 = vpack.c.bf16 %v1532_v8, %v1531_v9  ;;  %v199_v9 = vmul.f32 0.088388346, %v1813_v57  ;;  %v544_v57 = vshrl.u32 %v543_v58, 7 }
 0x175   :  { %v1535_v11 = vpop.permute.xlu1 %1534 }
 0x176   :  { %1449 = vmatprep.subr.msk.bf16.mxu1 %vm1850_vm1, %v1447_v10  ;;  %v1537_v12 = vunpack.i.h.bf16 %v1535_v11  ;;  %v1536_v13 = vunpack.i.l.bf16 %v1535_v11  ;;  %v545_v11 = vadd.s32 8, %v544_v57  ;;  %vm554_vm3 = vcmp.le.s32.totalorder %v1914_v61, %v544_v57 }
 0x177   :  { %v546_v63 = vadd.s32 16, %v544_v57 }
 0x178   :  { %v1453_v14 = vpack.c.bf16 %v1537_v12, %v1536_v13  ;;  %vm555_vm2 = vcmp.le.s32.totalorder %v1914_v61, %v545_v11  ;;  %v547_v12 = vadd.s32 24, %v544_v57 }
 0x179   :  { %v1545_v15 = vpop.permute.xlu0 %1544  ;;  %vm556_vm6 = vcmp.le.s32.totalorder %v1914_v61, %v546_v63 }
 0x17a   :  { %v1547_v16 = vunpack.i.h.bf16 %v1545_v15  ;;  %v1546_v17 = vunpack.i.l.bf16 %v1545_v15  ;;  %vm557_vm5 = vcmp.le.s32.totalorder %v1914_v61, %v547_v12 }
 0x17b   :  { %1452 = vmatpush3.bf16.xpose.msk.msra.mxu1 %vm1850_vm1, %v1447_v10  ;;  %v202_v10 = vmul.f32 0.088388346, %v1836_v0 }
 0x17c   :  { %1455 = vmatprep.subr.msk.bf16.mxu1 %vm1850_vm1, %v1453_v14  ;;  %v1459_v22 = vpack.c.bf16 %v1547_v16, %v1546_v17  ;;  %v548_v17 = vadd.s32 32, %v544_v57 }
 0x17d   :  { %v1540_v18 = vpop.permute.xlu1 %1539 }
 0x17e   :  { %v1542_v19 = vunpack.i.h.bf16 %v1540_v18  ;;  %v1541_v20 = vunpack.i.l.bf16 %v1540_v18  ;;  %vm558_vm7 = vcmp.le.s32.totalorder %v1914_v61, %v548_v17 }
 0x180   :  { %v1465_v21 = vpack.c.bf16 %v1542_v19, %v1541_v20 }
 0x181   :  { %v1550_v23 = vpop.permute.xlu1 %1549 }
 0x182   :  { %1467 = vmatprep.subr.msk.bf16.mxu0 %vm1850_vm1, %v1465_v21  ;;  %v1552_v24 = vunpack.i.h.bf16 %v1550_v23  ;;  %v1551_v25 = vunpack.i.l.bf16 %v1550_v23  ;;  %v550_v23 = vadd.s32 48, %v544_v57 }
 0x183   :  { %1458 = vmatpush3.bf16.xpose.msk.msra.mxu1 %vm1850_vm1, %v1453_v14  ;;  %1470 = vmatpush3.bf16.xpose.msk.msra.mxu0 %vm1850_vm1, %v1465_v21  ;;  %v549_v21 = vadd.s32 40, %v544_v57 }
 0x184   :  { %v1471_v26 = vpack.c.bf16 %v1552_v24, %v1551_v25  ;;  %1461 = vmatprep.subr.msk.bf16.mxu1 %vm1850_vm1, %v1459_v22  ;;  %vm560_vm9 = vcmp.le.s32.totalorder %v1914_v61, %v550_v23 }
 0x185   :  { %v1555_v27 = vpop.permute.xlu0 %1554  ;;  %vm559_vm8 = vcmp.le.s32.totalorder %v1914_v61, %v549_v21 }
 0x186   :  { %v1557_v28 = vunpack.i.h.bf16 %v1555_v27  ;;  %v1556_v29 = vunpack.i.l.bf16 %v1555_v27  ;;  %1473 = vmatprep.subr.msk.bf16.mxu0 %vm1850_vm1, %v1471_v26  ;;  %v551_v27 = vadd.s32 56, %v544_v57 }
 0x188   :  { %v1477_v30 = vpack.c.bf16 %v1557_v28, %v1556_v29  ;;  %vm561_vm10 = vcmp.le.s32.totalorder %v1914_v61, %v551_v27 }
 0x189   :  { %v1560_v31 = vpop.permute.xlu1 %1559  ;;  %v1570_v32 = vpop.permute.xlu0 %1569 }
 0x18a   :  { %v1562_v33 = vunpack.i.h.bf16 %v1560_v31  ;;  %v1561_v34 = vunpack.i.l.bf16 %v1560_v31  ;;  %v1572_v38 = vunpack.i.h.bf16 %v1570_v32  ;;  %v1571_v39 = vunpack.i.l.bf16 %v1570_v32 }
 0x18b   :  { %1464 = vmatpush3.bf16.xpose.msk.msra.mxu1 %vm1850_vm1, %v1459_v22  ;;  %1476 = vmatpush3.bf16.xpose.msk.msra.mxu0 %vm1850_vm1, %v1471_v26 }
 0x18c   :  { %1479 = vmatprep.subr.msk.bf16.mxu0 %vm1850_vm1, %v1477_v30  ;;  %v1483_v42 = vpack.c.bf16 %v1562_v33, %v1561_v34  ;;  %v1493_v52 = vpack.c.bf16 %v1572_v38, %v1571_v39 }
 0x18d   :  { %v1565_v35 = vpop.permute.xlu1 %1564 }
 0x18e   :  { %v1567_v36 = vunpack.i.h.bf16 %v1565_v35  ;;  %v1566_v37 = vunpack.i.l.bf16 %v1565_v35 }
 0x190   :  { %v1489_v43 = vpack.c.bf16 %v1567_v36, %v1566_v37 }
 0x191   :  { %v1575_v49 = vpop.permute.xlu1 %1574 }
 0x192   :  { %1314 = vmatmul.mubr.msk.f32.vlgmr.msra.gmra.mrb[0].mxu1 %vm228_vm0, %v189_v41  ;;  %1490 = vmatprep.subr.bf16.mxu1 %v1489_v43  ;;  %v1577_v54 = vunpack.i.h.bf16 %v1575_v49  ;;  %v1576_v56 = vunpack.i.l.bf16 %v1575_v49 }
 0x193   :  { %1316 = vmatprep.mubr.msk.f32.mxu1 %vm228_vm0, %v190_v46  ;;  %1482 = vmatpush3.bf16.xpose.msk.msra.mxu0 %vm1850_vm1, %v1477_v30 }
 0x194   :  { %1492 = vmatpush3.bf16.msra.mxu1 %v1489_v43  ;;  %1485 = vmatprep.subr.msk.bf16.mxu0 %vm1850_vm1, %v1483_v42  ;;  %v1497_v3 = vpack.c.bf16 %v1577_v54, %v1576_v56 }
 0x195   :  { %1494 = vmatprep.subr.bf16.mxu1 %v1493_v52  ;;  %v1580_v45 = vpop.permute.xlu1 %1579 }
 0x196   :  { %1317 = vmatmul.mubr.msk.f32.gmra.mrb[2].mxu1 %vm228_vm0, %v191_v2  ;;  %v1582_v4 = vunpack.i.h.bf16 %v1580_v45  ;;  %v1581_v6 = vunpack.i.l.bf16 %v1580_v45 }
 0x197   :  { %1319 = vmatprep.mubr.msk.f32.mxu1 %vm228_vm0, %v192_v40 }
 0x198   :  { %1496 = vmatpush3.bf16.msra.mxu1 %v1493_v52  ;;  %v1501_v8 = vpack.c.bf16 %v1582_v4, %v1581_v6 }
 0x199   :  { %1498 = vmatprep.subr.bf16.mxu1 %v1497_v3 }
 0x19a   :  { %1320 = vmatmul.mubr.msk.f32.gmra.mrb[4].mxu1 %vm228_vm0, %v193_v7 }
 0x19b   :  { %1322 = vmatprep.mubr.msk.f32.mxu1 %vm228_vm0, %v194_v44  ;;  %1488 = vmatpush3.bf16.xpose.msk.msra.mxu0 %vm1850_vm1, %v1483_v42 }
 0x19c   :  { %1500 = vmatpush3.bf16.msra.mxu1 %v1497_v3 }
 0x19d   :  { %1502 = vmatprep.subr.bf16.mxu1 %v1501_v8 }
 0x19e   :  { %1323 = vmatmul.mubr.msk.f32.gmra.mrb[6].mxu1 %vm228_vm0, %v195_v48 }
 0x1a0   :  { %1504 = vmatpush3.bf16.msra.mxu1 %v1501_v8 }
 0x1a2   :  { %1342 = vmatmul.mubr.msk.f32.vlgmr.msra.gmra.mrb[16].mxu0 %vm228_vm0, %v197_v47 }
 0x1a3   :  { %1344 = vmatprep.mubr.msk.f32.mxu0 %vm228_vm0, %v198_v51 }
 0x1a6   :  { %1345 = vmatmul.mubr.msk.f32.gmra.mrb[18].mxu0 %vm228_vm0, %v199_v9 }
 0x1a7   :  { %1347 = vmatprep.mubr.msk.f32.mxu0 %vm228_vm0, %v200_v5 }
 0x1aa   :  { %1348 = vmatmul.mubr.msk.f32.gmra.mrb[20].mxu0 %vm228_vm0, %v201_v50 }
 0x1ab   :  { %1350 = vmatprep.mubr.msk.f32.mxu0 %vm228_vm0, %v202_v10 }
 0x1ae   :  { %1351 = vmatmul.mubr.msk.f32.gmra.mrb[22].mxu0 %vm228_vm0, %v203_v53 }
 0x265   :  { %v1315_v60 = vpop.f32.mrb[0].mxu1 }
 0x266   :  { %v1920_v0 = vsel %vm555_vm2, %v1315_v60, -inf  ;;  %v335_v13 = vpop.f32.mrb[1].mxu1 }
 0x267   :  { %v1924_v14 = vsel %vm554_vm3, %v335_v13, -inf  ;;  %v598_v15 = vsel %vm594_vm4, %v1920_v0, -inf }
 0x268   :  { %599 = vmax.xlane.f32.xlu1 %v598_v15  ;;  %v595_v16 = vsel %vm594_vm4, %v1924_v14, -inf }
 0x269   :  { %v1318_v18 = vpop.f32.mrb[2].mxu1  ;;  %596 = vmax.xlane.f32.xlu0 %v595_v16 }
 0x26a   :  { %v1933_v19 = vsel %vm557_vm5, %v1318_v18, -inf  ;;  %v345_v20 = vpop.f32.mrb[3].mxu1 }
 0x26b   :  { %v604_v22 = vsel %vm594_vm4, %v1933_v19, -inf  ;;  %v1941_v24 = vsel %vm556_vm6, %v345_v20, -inf }
 0x26c   :  { %v601_v29 = vsel %vm594_vm4, %v1941_v24, -inf }
 0x26d   :  { %v1321_v25 = vpop.f32.mrb[4].mxu1  ;;  %605 = vmax.xlane.f32.xlu0 %v604_v22 }
 0x26e   :  { %v355_v26 = vpop.f32.mrb[5].mxu1  ;;  %v1955_v31 = vsel %vm559_vm8, %v1321_v25, -inf }
 0x26f   :  { %v1946_v28 = vsel %vm558_vm7, %v355_v26, -inf  ;;  %v610_v35 = vsel %vm594_vm4, %v1955_v31, -inf }
 0x270   :  { %v607_v30 = vsel %vm594_vm4, %v1946_v28, -inf }
 0x271   :  { %v1324_v32 = vpop.f32.mrb[6].mxu1  ;;  %602 = vmax.xlane.f32.xlu0 %v601_v29  ;;  %608 = vmax.xlane.f32.xlu1 %v607_v30 }
 0x272   :  { %v365_v33 = vpop.f32.mrb[7].mxu1  ;;  %v1968_v37 = vsel %vm561_vm10, %v1324_v32, -inf }
 0x273   :  { %v1960_v34 = vsel %vm560_vm9, %v365_v33, -inf  ;;  %v616_v42 = vsel %vm594_vm4, %v1968_v37, -inf }
 0x274   :  { %v613_v36 = vsel %vm594_vm4, %v1960_v34, -inf }
 0x275   :  { %611 = vmax.xlane.f32.xlu0 %v610_v35  ;;  %614 = vmax.xlane.f32.xlu1 %v613_v36  ;;  %v1343_v38 = vpop.f32.mrb[16].mxu0 }
 0x276   :  { %v504_v39 = vpop.f32.mrb[17].mxu0  ;;  %v1980_v46 = vsel %vm555_vm2, %v1343_v38, -inf }
 0x277   :  { %v1972_v41 = vsel %vm554_vm3, %v504_v39, -inf  ;;  %v622_v56 = vsel %vm594_vm4, %v1980_v46, -inf }
 0x278   :  { %v619_v43 = vsel %vm594_vm4, %v1972_v41, -inf }
 0x279   :  { %617 = vmax.xlane.f32.xlu0 %v616_v42  ;;  %620 = vmax.xlane.f32.xlu1 %v619_v43  ;;  %v1346_v49 = vpop.f32.mrb[18].mxu0 }
 0x27a   :  { %v514_v52 = vpop.f32.mrb[19].mxu0  ;;  %v1992_v40 = vsel %vm557_vm5, %v1346_v49, -inf }
 0x27b   :  { %v1984_v54 = vsel %vm556_vm6, %v514_v52, -inf  ;;  %v628_v6 = vsel %vm594_vm4, %v1992_v40, -inf }
 0x27c   :  { %v625_v2 = vsel %vm594_vm4, %v1984_v54, -inf }
 0x27d   :  { %623 = vmax.xlane.f32.xlu0 %v622_v56  ;;  %626 = vmax.xlane.f32.xlu1 %v625_v2  ;;  %v1349_v45 = vpop.f32.mrb[20].mxu0 }
 0x27e   :  { %v524_v3 = vpop.f32.mrb[21].mxu0  ;;  %v2004_v44 = vsel %vm559_vm8, %v1349_v45, -inf }
 0x27f   :  { %v1996_v4 = vsel %vm558_vm7, %v524_v3, -inf  ;;  %v634_v51 = vsel %vm594_vm4, %v2004_v44, -inf }
 0x280   :  { %v631_v7 = vsel %vm594_vm4, %v1996_v4, -inf }
 0x281   :  { %629 = vmax.xlane.f32.xlu0 %v628_v6  ;;  %632 = vmax.xlane.f32.xlu1 %v631_v7  ;;  %v1352_v8 = vpop.f32.mrb[22].mxu0 }
 0x282   :  { %v534_v48 = vpop.f32.mrb[23].mxu0  ;;  %v2016_v5 = vsel %vm561_vm10, %v1352_v8, -inf }
 0x283   :  { %v2008_v47 = vsel %vm560_vm9, %v534_v48, -inf  ;;  %v640_v50 = vsel %vm594_vm4, %v2016_v5, -inf }
 0x284   :  { %v637_v9 = vsel %vm594_vm4, %v2008_v47, -inf }
 0x285   :  { %635 = vmax.xlane.f32.xlu0 %v634_v51  ;;  %638 = vmax.xlane.f32.xlu1 %v637_v9 }
 0x289   :  { %641 = vmax.xlane.f32.xlu0 %v640_v50 }
 0x296   :  { %1589 = vrot.lane.b32.xlu1 %v1820_v59, %s1668_s0 }
 0x29f   :  { %1584 = vrot.lane.b32.xlu0 %v1809_v55, %s1668_s0 }
 0x2f5   :  { %v600_v10 = vpop.xlane.xlu1 %599 }
 0x2f6   :  { %v644_v53 = vsub.f32 %v1920_v0, %v600_v10  ;;  %v597_v58 = vpop.xlane.xlu0 %596 }
 0x2f7   :  { %v643_v57 = vsub.f32 %v1924_v14, %v597_v58 }
 0x2f8   :  { %v661_v11 = vmul.f32 1.442695, %v644_v53 }
 0x2f9   :  { %v659_v61 = vmul.f32 1.442695, %v643_v57 }
 0x2fa   :  { %1603 = vpow2.f32 %v661_v11  ;;  %v606_v12 = vpop.xlane.xlu0 %605 }
 0x2fb   :  { %1605 = vpow2.f32 %v659_v61  ;;  %v646_v60 = vsub.f32 %v1933_v19, %v606_v12 }
 0x2fd   :  { %v665_v13 = vmul.f32 1.442695, %v646_v60 }
 0x2fe   :  { %v603_v63 = vpop.xlane.xlu0 %602  ;;  %v609_v15 = vpop.xlane.xlu1 %608 }
 0x2ff   :  { %1607 = vpow2.f32 %v665_v13  ;;  %v645_v59 = vsub.f32 %v1941_v24, %v603_v63  ;;  %v647_v55 = vsub.f32 %v1946_v28, %v609_v15 }
 0x301   :  { %v663_v16 = vmul.f32 1.442695, %v645_v59  ;;  %v667_v0 = vmul.f32 1.442695, %v647_v55 }
 0x302   :  { %v612_v17 = vpop.xlane.xlu0 %611  ;;  %v615_v18 = vpop.xlane.xlu1 %614 }
 0x303   :  { %1609 = vpow2.f32 %v663_v16  ;;  %v648_v14 = vsub.f32 %v1955_v31, %v612_v17  ;;  %v649_v22 = vsub.f32 %v1960_v34, %v615_v18 }
 0x304   :  { %v2030_v20 = vpop.eup %1603  ;;  %1611 = vpow2.f32 %v667_v0 }
 0x305   :  { %v2032_v21 = vpop.eup %1605  ;;  %v669_v19 = vmul.f32 1.442695, %v648_v14  ;;  %v694_v23 = vsel %vm594_vm4, %v2030_v20, 0.0  ;;  %v671_v30 = vmul.f32 1.442695, %v649_v22 }
 0x306   :  { %v618_v24 = vpop.xlane.xlu0 %617  ;;  %v621_v25 = vpop.xlane.xlu1 %620  ;;  %695 = vadd.xlane.f32.xlu0 %v694_v23  ;;  %v691_v26 = vsel %vm594_vm4, %v2032_v21, 0.0 }
 0x307   :  { %1613 = vpow2.f32 %v669_v19  ;;  %v650_v27 = vsub.f32 %v1968_v37, %v618_v24  ;;  %v651_v28 = vsub.f32 %v1972_v41, %v621_v25  ;;  %692 = vadd.xlane.f32.xlu1 %v691_v26 }
 0x309   :  { %v2041_v29 = vpop.eup %1607  ;;  %v673_v31 = vmul.f32 1.442695, %v650_v27  ;;  %v675_v32 = vmul.f32 1.442695, %v651_v28 }
 0x30a   :  { %v624_v33 = vpop.xlane.xlu0 %623  ;;  %v627_v34 = vpop.xlane.xlu1 %626  ;;  %v700_v35 = vsel %vm594_vm4, %v2041_v29, 0.0 }
 0x30b   :  { %1615 = vpow2.f32 %v673_v31  ;;  %v652_v36 = vsub.f32 %v1980_v46, %v624_v33  ;;  %701 = vadd.xlane.f32.xlu0 %v700_v35  ;;  %v653_v46 = vsub.f32 %v1984_v54, %v627_v34 }
 0x30c   :  { %1617 = vpow2.f32 %v675_v32 }
 0x30d   :  { %v2046_v38 = vpop.eup %1609  ;;  %1619 = vpow2.f32 %v671_v30  ;;  %v677_v37 = vmul.f32 1.442695, %v652_v36  ;;  %v679_v7 = vmul.f32 1.442695, %v653_v46 }
 0x30e   :  { %v630_v39 = vpop.xlane.xlu0 %629  ;;  %v697_v41 = vsel %vm594_vm4, %v2046_v38, 0.0  ;;  %v2050_v42 = vpop.eup %1611 }
 0x30f   :  { %v654_v43 = vsub.f32 %v1992_v40, %v630_v39  ;;  %698 = vadd.xlane.f32.xlu1 %v697_v41  ;;  %v633_v49 = vpop.xlane.xlu1 %632  ;;  %1621 = vpow2.f32 %v677_v37  ;;  %v703_v3 = vsel %vm594_vm4, %v2050_v42, 0.0 }
 0x310   :  { %v655_v8 = vsub.f32 %v1996_v4, %v633_v49 }
 0x311   :  { %v2053_v52 = vpop.eup %1613  ;;  %v681_v56 = vmul.f32 1.442695, %v654_v43 }
 0x312   :  { %v636_v2 = vpop.xlane.xlu0 %635  ;;  %v706_v45 = vsel %vm594_vm4, %v2053_v52, 0.0  ;;  %v683_v58 = vmul.f32 1.442695, %v655_v8 }
 0x313   :  { %v656_v6 = vsub.f32 %v2004_v44, %v636_v2  ;;  %707 = vadd.xlane.f32.xlu0 %v706_v45  ;;  %704 = vadd.xlane.f32.xlu1 %v703_v3  ;;  %1623 = vpow2.f32 %v681_v56  ;;  %v639_v51 = vpop.xlane.xlu1 %638 }
 0x314   :  { %v657_v4 = vsub.f32 %v2008_v47, %v639_v51 }
 0x315   :  { %v2061_v40 = vpop.eup %1615  ;;  %v685_v48 = vmul.f32 1.442695, %v656_v6 }
 0x316   :  { %v2064_v54 = vpop.eup %1617  ;;  %v642_v9 = vpop.xlane.xlu0 %641  ;;  %v712_v50 = vsel %vm594_vm4, %v2061_v40, 0.0 }
 0x317   :  { %v2068_v10 = vpop.eup %1619  ;;  %1625 = vpow2.f32 %v685_v48  ;;  %v658_v44 = vsub.f32 %v2016_v5, %v642_v9  ;;  %713 = vadd.xlane.f32.xlu0 %v712_v50  ;;  %v715_v53 = vsel %vm594_vm4, %v2064_v54, 0.0  ;;  %v687_v5 = vmul.f32 1.442695, %v657_v4  ;;  %v1590_v25 = vpop.permute.xlu1 %1589 }
 0x318   :  { %1627 = vpow2.f32 %v679_v7  ;;  %716 = vadd.xlane.f32.xlu1 %v715_v53  ;;  %v709_v61 = vsel %vm594_vm4, %v2068_v10, 0.0  ;;  %v1592_v33 = vunpack.i.h.bf16 %v1590_v25  ;;  %v1591_v34 = vunpack.i.l.bf16 %v1590_v25 }
 0x319   :  { %v689_v57 = vmul.f32 1.442695, %v658_v44  ;;  %v2076_v12 = vpop.eup %1621 }
 0x31a   :  { %v1585_v11 = vpop.permute.xlu0 %1584  ;;  %v718_v15 = vsel %vm594_vm4, %v2076_v12, 0.0 }
 0x31b   :  { %1629 = vpow2.f32 %v689_v57  ;;  %v1587_v60 = vunpack.i.h.bf16 %v1585_v11  ;;  %v1586_v13 = vunpack.i.l.bf16 %v1585_v11  ;;  %710 = vadd.xlane.f32.xlu0 %v709_v61 }
 0x31c   :  { %1631 = vpow2.f32 %v683_v58 }
 0x31d   :  { %v1505_v63 = vpack.c.bf16 %v1587_v60, %v1586_v13  ;;  %v2080_v59 = vpop.eup %1623  ;;  %1633 = vpow2.f32 %v687_v5 }
 0x31e   :  { %v724_v55 = vsel %vm594_vm4, %v2080_v59, 0.0 }
 0x31f   :  { %719 = vadd.xlane.f32.xlu0 %v718_v15  ;;  %1506 = vmatprep.subr.bf16.mxu1 %v1505_v63 }
 0x321   :  { %v2082_v47 = vpop.eup %1625 }
 0x322   :  { %v730_v16 = vsel %vm594_vm4, %v2082_v47, 0.0  ;;  %v2088_v0 = vpop.eup %1627 }
 0x323   :  { %725 = vadd.xlane.f32.xlu0 %v724_v55  ;;  %731 = vadd.xlane.f32.xlu1 %v730_v16  ;;  %v721_v18 = vsel %vm594_vm4, %v2088_v0, 0.0 }
 0x325   :  { %v2090_v17 = vpop.eup %1629 }
 0x326   :  { %v736_v14 = vsel %vm594_vm4, %v2090_v17, 0.0  ;;  %v2096_v19 = vpop.eup %1631 }
 0x327   :  { %722 = vadd.xlane.f32.xlu0 %v721_v18  ;;  %737 = vadd.xlane.f32.xlu1 %v736_v14  ;;  %v727_v22 = vsel %vm594_vm4, %v2096_v19, 0.0  ;;  %v2100_v23 = vpop.eup %1633 }
 0x328   :  { %v733_v24 = vsel %vm594_vm4, %v2100_v23, 0.0 }
 0x32b   :  { %728 = vadd.xlane.f32.xlu0 %v727_v22 }
 0x32f   :  { %734 = vadd.xlane.f32.xlu0 %v733_v24 }
 0x338   :  { %1599 = vrot.lane.b32.xlu1 %v1840_v1, %s1668_s0 }
 0x345   :  { %1594 = vrot.lane.b32.xlu0 %v1830_v62, %s1668_s0  ;;  %v1509_v62 = vpack.c.bf16 %v1592_v33, %v1591_v34 }
 0x393   :  { %v696_v26 = vpop.xlane.xlu0 %695 }
 0x394   :  { %1635 = vrcp.f32 %v696_v26  ;;  %v693_v27 = vpop.xlane.xlu1 %692 }
 0x395   :  { %1637 = vrcp.f32 %v693_v27 }
 0x398   :  { %v702_v28 = vpop.xlane.xlu0 %701 }
 0x399   :  { %1639 = vrcp.f32 %v702_v28 }
 0x39c   :  { %v699_v30 = vpop.xlane.xlu1 %698 }
 0x39d   :  { %1641 = vrcp.f32 %v699_v30 }
 0x39e   :  { %v1636_v31 = vpop.eup %1635 }
 0x39f   :  { %v1638_v32 = vpop.eup %1637  ;;  %v756_v37 = vmul.f32 %v1636_v31, %v2030_v20 }
 0x3a0   :  { %v708_v35 = vpop.xlane.xlu0 %707  ;;  %v705_v36 = vpop.xlane.xlu1 %704  ;;  %v755_v1 = vmul.f32 %v1638_v32, %v2032_v21 }
 0x3a1   :  { %1643 = vrcp.f32 %v708_v35 }
 0x3a2   :  { %1645 = vrcp.f32 %v705_v36  ;;  %1369 = vmatprep.mubr.msk.f32.mxu1 %vm594_vm4, %v755_v1 }
 0x3a3   :  { %1370 = vmatmul.mubr.msk.f32.vlgmr.msra.gmra.mrb[8].mxu1 %vm594_vm4, %v756_v37  ;;  %v1640_v41 = vpop.eup %1639 }
 0x3a4   :  { %1508 = vmatpush3.bf16.msra.mxu1 %v1505_v63  ;;  %v714_v39 = vpop.xlane.xlu0 %713  ;;  %v758_v20 = vmul.f32 %v1640_v41, %v2041_v29 }
 0x3a5   :  { %1510 = vmatprep.subr.bf16.mxu1 %v1509_v62  ;;  %v717_v43 = vpop.xlane.xlu1 %716  ;;  %1647 = vrcp.f32 %v714_v39 }
 0x3a6   :  { %1649 = vrcp.f32 %v717_v43 }
 0x3a7   :  { %v1642_v49 = vpop.eup %1641 }
 0x3a8   :  { %1512 = vmatpush3.bf16.msra.mxu1 %v1509_v62  ;;  %v711_v46 = vpop.xlane.xlu0 %710  ;;  %v757_v21 = vmul.f32 %v1642_v49, %v2046_v38 }
 0x3a9   :  { %1651 = vrcp.f32 %v711_v46 }
 0x3aa   :  { %1372 = vmatprep.mubr.msk.f32.mxu1 %vm594_vm4, %v757_v21 }
 0x3ab   :  { %v1644_v56 = vpop.eup %1643  ;;  %1373 = vmatmul.mubr.msk.f32.gmra.mrb[10].mxu1 %vm594_vm4, %v758_v20 }
 0x3ac   :  { %v1646_v2 = vpop.eup %1645  ;;  %v720_v45 = vpop.xlane.xlu0 %719  ;;  %v760_v3 = vmul.f32 %v1644_v56, %v2053_v52 }
 0x3ad   :  { %v759_v6 = vmul.f32 %v1646_v2, %v2050_v42  ;;  %1653 = vrcp.f32 %v720_v45 }
 0x3af   :  { %1375 = vmatprep.mubr.msk.f32.mxu1 %vm594_vm4, %v759_v6  ;;  %v1648_v38 = vpop.eup %1647 }
 0x3b0   :  { %1376 = vmatmul.mubr.msk.f32.gmra.mrb[12].mxu1 %vm594_vm4, %v760_v3  ;;  %v726_v7 = vpop.xlane.xlu0 %725  ;;  %v1650_v8 = vpop.eup %1649  ;;  %v762_v50 = vmul.f32 %v1648_v38, %v2061_v40 }
 0x3b1   :  { %v732_v48 = vpop.xlane.xlu1 %731  ;;  %v763_v52 = vmul.f32 %v1650_v8, %v2064_v54 }
 0x3b3   :  { %v1652_v29 = vpop.eup %1651 }
 0x3b4   :  { %v723_v51 = vpop.xlane.xlu0 %722  ;;  %v761_v9 = vmul.f32 %v1652_v29, %v2068_v10 }
 0x3b5   :  { %v738_v42 = vpop.xlane.xlu1 %737  ;;  %1655 = vrcp.f32 %v723_v51 }
 0x3b6   :  { %1378 = vmatprep.mubr.msk.f32.mxu1 %vm594_vm4, %v761_v9  ;;  %1657 = vrcp.f32 %v726_v7 }
 0x3b7   :  { %1379 = vmatmul.mubr.msk.f32.gmra.mrb[14].mxu1 %vm594_vm4, %v762_v50  ;;  %v1654_v54 = vpop.eup %1653 }
 0x3b8   :  { %v729_v44 = vpop.xlane.xlu0 %728  ;;  %1397 = vmatprep.mubr.msk.f32.mxu1 %vm594_vm4, %v763_v52  ;;  %v764_v5 = vmul.f32 %v1654_v54, %v2076_v12 }
 0x3b9   :  { %v1600_v58 = vpop.permute.xlu1 %1599  ;;  %1659 = vrcp.f32 %v729_v44 }
 0x3ba   :  { %v1602_v57 = vunpack.i.h.bf16 %v1600_v58  ;;  %v1601_v11 = vunpack.i.l.bf16 %v1600_v58  ;;  %1661 = vrcp.f32 %v732_v48 }
 0x3bc   :  { %v735_v53 = vpop.xlane.xlu0 %734  ;;  %v1517_v60 = vpack.c.bf16 %v1602_v57, %v1601_v11 }
 0x3bd   :  { %1663 = vrcp.f32 %v735_v53 }
 0x3be   :  { %1665 = vrcp.f32 %v738_v42 }
 0x3bf   :  { %v1656_v13 = vpop.eup %1655 }
 0x3c0   :  { %v1595_v4 = vpop.permute.xlu0 %1594  ;;  %v1658_v63 = vpop.eup %1657  ;;  %v765_v15 = vmul.f32 %v1656_v13, %v2088_v0 }
 0x3c1   :  { %v1597_v10 = vunpack.i.h.bf16 %v1595_v4  ;;  %v1596_v61 = vunpack.i.l.bf16 %v1595_v4  ;;  %v766_v16 = vmul.f32 %v1658_v63, %v2080_v59 }
 0x3c3   :  { %v1513_v40 = vpack.c.bf16 %v1597_v10, %v1596_v61  ;;  %v1660_v55 = vpop.eup %1659 }
 0x3c4   :  { %v1662_v18 = vpop.eup %1661  ;;  %v767_v14 = vmul.f32 %v1660_v55, %v2096_v19 }
 0x3c5   :  { %1514 = vmatprep.subr.bf16.mxu1 %v1513_v40  ;;  %v768_v12 = vmul.f32 %v1662_v18, %v2082_v47 }
 0x3c6   :  { %1516 = vmatpush3.bf16.msra.mxu1 %v1513_v40 }
 0x3c7   :  { %1518 = vmatprep.subr.bf16.mxu1 %v1517_v60  ;;  %v1664_v22 = vpop.eup %1663 }
 0x3c8   :  { %v1666_v24 = vpop.eup %1665  ;;  %v769_v0 = vmul.f32 %v1664_v22, %v2100_v23 }
 0x3c9   :  { %v770_v25 = vmul.f32 %v1666_v24, %v2090_v17 }
 0x3ca   :  { %1520 = vmatpush3.bf16.msra.mxu1 %v1517_v60 }
 0x3cd   :  { %1398 = vmatmul.mubr.msk.f32.vlgmr.msra.gmra.mrb[16].mxu1 %vm594_vm4, %v764_v5 }
 0x3ce   :  { %1400 = vmatprep.mubr.msk.f32.mxu1 %vm594_vm4, %v765_v15 }
 0x3d1   :  { %1401 = vmatmul.mubr.msk.f32.gmra.mrb[18].mxu1 %vm594_vm4, %v766_v16 }
 0x3d2   :  { %1403 = vmatprep.mubr.msk.f32.mxu1 %vm594_vm4, %v767_v14 }
 0x3d5   :  { %1404 = vmatmul.mubr.msk.f32.gmra.mrb[20].mxu1 %vm594_vm4, %v768_v12 }
 0x3d6   :  { %1406 = vmatprep.mubr.msk.f32.mxu1 %vm594_vm4, %v769_v0 }
 0x3d9   :  { %1407 = vmatmul.mubr.msk.f32.gmra.mrb[22].mxu1 %vm594_vm4, %v770_v25 }
 0x476   :  { %v1371_v59 = vpop.f32.mrb[8].mxu1 }
 0x477   :  { %1078 = vst.msk [vmem:[%s2206_s2 + $0x8] sm:$0xff] %vm228_vm0, %v1371_v59  ;;  %v885_v19 = vpop.f32.mrb[9].mxu1 }
 0x478   :  { %1077 = vst.msk [vmem:[%s2206_s2] sm:$0xff] %vm228_vm0, %v885_v19 }
 0x47e   :  { %v1374_v47 = vpop.f32.mrb[10].mxu1 }
 0x47f   :  { %1080 = vst.msk [vmem:[%s2206_s2 + $0x18] sm:$0xff] %vm228_vm0, %v1374_v47  ;;  %v895_v17 = vpop.f32.mrb[11].mxu1 }
 0x480   :  { %1079 = vst.msk [vmem:[%s2206_s2 + $0x10] sm:$0xff] %vm228_vm0, %v895_v17 }
 0x483   :  { %v1377_v23 = vpop.f32.mrb[12].mxu1 }
 0x484   :  { %1082 = vst.msk [vmem:[%s2206_s2 + $0x28] sm:$0xff] %vm228_vm0, %v1377_v23  ;;  %v905_v26 = vpop.f32.mrb[13].mxu1 }
 0x485   :  { %1081 = vst.msk [vmem:[%s2206_s2 + $0x20] sm:$0xff] %vm228_vm0, %v905_v26 }
 0x48a   :  { %v1380_v27 = vpop.f32.mrb[14].mxu1 }
 0x48b   :  { %1084 = vst.msk [vmem:[%s2206_s2 + $0x38] sm:$0xff] %vm228_vm0, %v1380_v27  ;;  %v915_v28 = vpop.f32.mrb[15].mxu1 }
 0x48c   :  { %1083 = vst.msk [vmem:[%s2206_s2 + $0x30] sm:$0xff] %vm228_vm0, %v915_v28 }
 0x4a0   :  { %v1399_v30 = vpop.f32.mrb[16].mxu1 }
 0x4a1   :  { %1086 = vst.msk [vmem:[%s2206_s2 + $0x48] sm:$0xff] %vm228_vm0, %v1399_v30  ;;  %v1038_v31 = vpop.f32.mrb[17].mxu1 }
 0x4a2   :  { %1085 = vst.msk [vmem:[%s2206_s2 + $0x40] sm:$0xff] %vm228_vm0, %v1038_v31 }
 0x4a4   :  { %v1402_v32 = vpop.f32.mrb[18].mxu1 }
 0x4a5   :  { %1088 = vst.msk [vmem:[%s2206_s2 + $0x58] sm:$0xff] %vm228_vm0, %v1402_v32  ;;  %v1048_v33 = vpop.f32.mrb[19].mxu1 }
 0x4a6   :  { %1087 = vst.msk [vmem:[%s2206_s2 + $0x50] sm:$0xff] %vm228_vm0, %v1048_v33 }
 0x4a8   :  { %v1405_v34 = vpop.f32.mrb[20].mxu1 }
 0x4a9   :  { %1090 = vst.msk [vmem:[%s2206_s2 + $0x68] sm:$0xff] %vm228_vm0, %v1405_v34  ;;  %v1058_v35 = vpop.f32.mrb[21].mxu1 }
 0x4aa   :  { %1089 = vst.msk [vmem:[%s2206_s2 + $0x60] sm:$0xff] %vm228_vm0, %v1058_v35 }
 0x4ac   :  { %v1408_v36 = vpop.f32.mrb[22].mxu1 }
 0x4ad   :  { %1092 = vst.msk [vmem:[%s2206_s2 + $0x78] sm:$0xff] %vm228_vm0, %v1408_v36  ;;  %v1068_v1 = vpop.f32.mrb[23].mxu1 }
 0x4ae   :  { %1091 = vst.msk [vmem:[%s2206_s2 + $0x70] sm:$0xff] %vm228_vm0, %v1068_v1 }

</bundles_post_ra>
